<compile_context>
chip_gen: v5e
topology: v5e:2x2
jax: 0.10.0
libtpu: 0.0.40
codegen_flags: <defaults>
</compile_context>

<pallas_src>
import functools

import jax
import jax.numpy as jnp
from jax import lax
from jax.experimental import pallas as pl
from jax.experimental.pallas import tpu as pltpu


def _round_up(x, m):
    return (x + m - 1) // m * m


def _sublane(itemsize):
    # f32 -> 8, bf16 -> 16, int8/fp8 -> 32 rows per packed sublane tile.
    return max(8, 32 // max(1, itemsize))


def _device_vmem_plan():
    """Returns (tm-sizing budget, vmem_limit_bytes) for the local TPU gen."""
    kind = ""
    try:
        kind = jax.devices()[0].device_kind.lower()
    except Exception:  # pragma: no cover - defensive, e.g. odd backends
        pass
    if "v7" in kind or "tpu7" in kind:      # v7x: 64 MiB physical VMEM per TC
        return 40 * 2**20, 48 * 2**20
    return 64 * 2**20, 80 * 2**20           # v5e / v6e: 128 MiB physical VMEM


def _pick_tm(K, D, itemsize, budget_bytes, tm_max=512, sublane=8):
    """Largest power-of-two row tile whose working set fits the VMEM budget."""
    tm = tm_max
    while tm > sublane:
        resident = K * D * itemsize + K * 4            # codebook + 0.5||e||^2 (single-buffered)
        tiles = 2 * 2 * (tm * D * itemsize)            # x and q tiles, double-buffered
        inter = 4 * tm * K * 4 + 3 * tm * D * 4        # (tm,K) score slabs + f32 q/diff
        sse = 2 * tm * 4                               # per-row SSE partials
        if resident + tiles + inter + sse <= budget_bytes:
            break
        tm //= 2
    return max(tm, sublane)


def vq_kernel(x_ref, e_ref, e2_ref, q_ref, sse_ref, *, matmul_dtype=None):
    """One tile of flattened rows vs. the full (resident, K-padded) codebook.

    x_ref:   (tm, D)  input rows
    e_ref:   (Kp, D)  codebook, K padded up to a multiple of 128 (zero rows)
    e2_ref:  (1, Kp)  0.5*||e||^2; padded entries are huge (never win argmin)
    q_ref:   (tm, D)  nearest codebook rows
    sse_ref: (tm, 1)  per-row squared error ||q - x||^2 (summed in wrapper)
    """
    x = x_ref[...]                                    # (tm, D)
    e = e_ref[...]                                    # (Kp, D)

    # Optional reduced-precision MXU feed (exact by default; bf16 can flip
    # near-tie argmins, which is usually acceptable for VQ).
    xm = x if matmul_dtype is None else x.astype(matmul_dtype)
    em = e if matmul_dtype is None else e.astype(matmul_dtype)

    # argmin_k ||x - e_k||^2 == argmin_k (0.5*||e_k||^2 - x.e_k): the per-row
    # ||x||^2 term and the factor of 2 are argmin-invariant and dropped.
    # dot_general contracts dim 1 of x with dim 1 of e -> no codebook
    # transpose inside the loop.
    xe = lax.dot_general(xm, em, (((1,), (1,)), ((), ())),
                         preferred_element_type=jnp.float32)        # (tm, Kp)
    score = e2_ref[...] - xe                                         # (tm, Kp)

    # First-occurrence argmin (torch parity on ties) built from min-reduce +
    # masked iota-min — all ops with guaranteed Mosaic lowerings.
    kp = score.shape[-1]
    col = lax.broadcasted_iota(jnp.int32, score.shape, 1)            # (tm, Kp)
    min_score = jnp.min(score, axis=-1, keepdims=True)               # (tm, 1)
    idx = jnp.min(jnp.where(score == min_score, col, kp),
                  axis=-1, keepdims=True)                            # (tm, 1)

    # Codebook gather as a one-hot matmul (MXU-friendly gather).
    onehot = (col == idx).astype(e.dtype)                            # (tm, Kp)
    q = jnp.dot(onehot, e, preferred_element_type=jnp.float32)       # (tm, D)
    q_ref[...] = q.astype(q_ref.dtype)

    # Per-row squared error for the VQ / commitment loss. Per-tile partials
    # keep the grid axis "parallel" (no carried accumulator), so v7x can
    # shard tiles across both TensorCores.
    diff = q - x.astype(jnp.float32)
    sse_ref[...] = jnp.sum(diff * diff, axis=-1, keepdims=True)

    # TODO(synk): training-only bookkeeping (usage_count update, dead-code
    # restart in check_dead_codes) is stateful / RNG-driven and not part of
    # the eval forward pass; intentionally omitted.


def vector_quantizer_forward(inputs, embedding_weight, commitment_cost=0.25,
                             tm=None, matmul_dtype=None):
    """Pallas VectorQuantizer forward. Returns (quantized, loss)."""
    input_shape = inputs.shape
    K, D = embedding_weight.shape
    x_flat = inputs.reshape(-1, D)
    M = x_flat.shape[0]
    itemsize = x_flat.dtype.itemsize
    sub = _sublane(itemsize)

    budget, vmem_limit = _device_vmem_plan()
    if tm is None:
        tm = _pick_tm(K, D, itemsize, budget, tm_max=512, sublane=sub)
    # Keep >= 2 grid steps when possible (v7x has 2 TensorCores) and never
    # tile wider than the sublane-rounded problem itself.
    tm = max(sub, min(tm, _round_up(pl.cdiv(M, 2), sub)))
    num_tiles = pl.cdiv(M, tm)   # ragged last tile: Pallas masks OOB writebacks

    # Pad K to a lane-dense multiple of 128. Padded codebook rows are zero and
    # their 0.5*||e||^2 entry is huge, so they can never win the argmin.
    K_pad = _round_up(K, 128)
    e_pad = embedding_weight
    if K_pad != K:
        e_pad = jnp.pad(embedding_weight, ((0, K_pad - K), (0, 0)))
    e2_half = 0.5 * jnp.sum(e_pad.astype(jnp.float32) ** 2, axis=-1)
    e2_half = jnp.where(jnp.arange(K_pad) < K, e2_half,
                        jnp.float32(1e30))[None, :]                  # (1, Kp)

    kernel = functools.partial(vq_kernel, matmul_dtype=matmul_dtype)

    def build(single_buffer_consts):
        # Codebook / ||e||^2 have a constant index_map; single-buffering them
        # halves their VMEM footprint (matters for large codebooks on v7x).
        const_kw = ({"pipeline_mode": pl.Buffered(1)}
                    if single_buffer_consts else {})
        return pl.pallas_call(
            kernel,
            out_shape=(
                jax.ShapeDtypeStruct((M, D), inputs.dtype),
                jax.ShapeDtypeStruct((M, 1), jnp.float32),
            ),
            grid=(num_tiles,),
            in_specs=[
                pl.BlockSpec((tm, D), lambda i: (i, 0)),            # input tile
                pl.BlockSpec((K_pad, D), lambda i: (0, 0), **const_kw),   # codebook
                pl.BlockSpec((1, K_pad), lambda i: (0, 0), **const_kw),   # 0.5||e||^2
            ],
            out_specs=[
                pl.BlockSpec((tm, D), lambda i: (i, 0)),            # quantized tile
                pl.BlockSpec((tm, 1), lambda i: (i, 0)),            # per-row SSE
            ],
            compiler_params=pltpu.CompilerParams(
                dimension_semantics=("parallel",),                  # no carried state
                vmem_limit_bytes=vmem_limit,
            ),
        )

    try:
        quant_flat, row_sse = build(True)(x_flat, e_pad, e2_half)
    except Exception:
        # Fallback if single-buffered constant blocks are not supported.
        quant_flat, row_sse = build(False)(x_flat, e_pad, e2_half)

    # Final reduction of the per-row partials (no padded rows exist: the
    # ragged last tile's out-of-bounds rows were masked out of the writeback).
    sse = jnp.sum(row_sse)
    mse = sse / jnp.float32(M * D)
    # Forward value of mean((q.detach()-x)^2) + cc*mean((q-x.detach())^2).
    loss = (1.0 + commitment_cost) * mse

    # The straight-through estimator `x + (q - x).detach()` is numerically the
    # identity on the forward value, so `quantized` is returned directly and
    # the extra full-tensor HBM pass is skipped.
    # TODO(synk): wrap in jax.custom_vjp for training-time gradients (STE +
    # codebook/commitment grads); this path is forward-only.
    quantized = quant_flat.reshape(input_shape)
    return quantized, loss


if __name__ == "__main__":
    num_embeddings = 64
    embedding_dim = 32
    commitment_cost = 0.25

    key = jax.random.PRNGKey(0)
    k_emb, k_in = jax.random.split(key)

    # nn.Embedding weight reset: uniform(-1/K, 1/K), deterministic here.
    embedding_weight = jax.random.uniform(
        k_emb, (num_embeddings, embedding_dim), dtype=jnp.float32,
        minval=-1.0 / num_embeddings, maxval=1.0 / num_embeddings)

    # layout: (batch, seq, embedding_dim) channels-last input.
    inputs = jax.random.normal(k_in, (2, 8, embedding_dim), dtype=jnp.float32)

    quantized, loss = vector_quantizer_forward(
        inputs, embedding_weight, commitment_cost=commitment_cost)
    jax.block_until_ready((quantized, loss))

    assert quantized.shape == inputs.shape
    assert quantized.dtype == inputs.dtype
    assert loss.shape == ()

    # Tie-robust pure-JAX reference check: each quantized row must be at the
    # true minimum codebook distance, and the loss must match the torch
    # forward value (1 + cc) * mse.
    xf = inputs.reshape(-1, embedding_dim)
    d2_ref = jnp.sum((xf[:, None, :] - embedding_weight[None, :, :]) ** 2, axis=-1)
    min_d2 = jnp.min(d2_ref, axis=-1)
    got_d2 = jnp.sum((xf - quantized.reshape(-1, embedding_dim)) ** 2, axis=-1)
    assert jnp.allclose(got_d2, min_d2, atol=1e-4, rtol=1e-4)
    ref_loss = (1.0 + commitment_cost) * jnp.mean(min_d2) / embedding_dim
    assert jnp.allclose(loss, ref_loss, atol=1e-5, rtol=1e-4)

    print("KERNEL_OK")
</pallas_src>

<mosaic_0001>
module attributes {stable_mosaic.version = 11 : i64} {
  func.func @vq_kernel(%arg0: i32, %arg1: memref<8x32xf32, #tpu.memory_space<vmem>>, %arg2: memref<128x32xf32, #tpu.memory_space<vmem>>, %arg3: memref<1x128xf32, #tpu.memory_space<vmem>>, %arg4: memref<8x32xf32, #tpu.memory_space<vmem>>, %arg5: memref<8x1xf32, #tpu.memory_space<vmem>>) attributes {dimension_semantics = [#tpu.dimension_semantics<parallel>], iteration_bounds = array<i64: 2>, scalar_prefetch = 0 : i64, scratch_operands = 0 : i64, tpu.core_type = #tpu.core_type<tc>, window_params = [{transform_indices = @transform_0, window_bounds = array<i64: 8, 32>}, {pipeline_mode = #tpu.pipeline_mode<synchronous>, transform_indices = @transform_1, window_bounds = array<i64: 128, 32>}, {pipeline_mode = #tpu.pipeline_mode<synchronous>, transform_indices = @transform_2, window_bounds = array<i64: 1, 128>}, {transform_indices = @transform_3, window_bounds = array<i64: 8, 32>}, {transform_indices = @transform_4, window_bounds = array<i64: 8, 1>}]} {
    %c0 = arith.constant 0 : index
    %c0_0 = arith.constant 0 : index
    %0 = vector.load %arg1[%c0, %c0_0] : memref<8x32xf32, #tpu.memory_space<vmem>>, vector<8x32xf32>
    %c0_1 = arith.constant 0 : index
    %c0_2 = arith.constant 0 : index
    %1 = vector.load %arg2[%c0_1, %c0_2] : memref<128x32xf32, #tpu.memory_space<vmem>>, vector<128x32xf32>
    %cst = arith.constant dense<0.000000e+00> : vector<8x128xf32>
    %2 = tpu.matmul %0, %1, %cst {dimension_numbers = #tpu.dot_dimension_numbers<[1], [1], [0], [0], [0, 0, 1, 0], [], []>} : vector<8x32xf32>, vector<128x32xf32>, vector<8x128xf32> -> vector<8x128xf32>
    %c0_3 = arith.constant 0 : index
    %c0_4 = arith.constant 0 : index
    %3 = vector.load %arg3[%c0_3, %c0_4] : memref<1x128xf32, #tpu.memory_space<vmem>>, vector<1x128xf32>
    %4 = vector.broadcast %3 : vector<1x128xf32> to vector<8x128xf32>
    %5 = arith.subf %4, %2 : vector<8x128xf32>
    %6 = tpu.iota {dimensions = array<i32: 1>} : vector<8x128xi32>
    %cst_5 = arith.constant dense<0x7F800000> : vector<8xf32>
    %7 = vector.multi_reduction <minimumf>, %5, %cst_5 [1] : vector<8x128xf32> to vector<8xf32>
    %8 = vector.shape_cast %7 : vector<8xf32> to vector<8x1xf32>
    %9 = vector.broadcast %8 : vector<8x1xf32> to vector<8x128xf32>
    %10 = arith.cmpf oeq, %5, %9 : vector<8x128xf32>
    %c128_i32 = arith.constant 128 : i32
    %11 = vector.broadcast %c128_i32 : i32 to vector<8x128xi32>
    %12 = arith.select %10, %6, %11 : vector<8x128xi1>, vector<8x128xi32>
    %cst_6 = arith.constant dense<2147483647> : vector<8xi32>
    %13 = vector.multi_reduction <minsi>, %12, %cst_6 [1] : vector<8x128xi32> to vector<8xi32>
    %14 = vector.shape_cast %13 : vector<8xi32> to vector<8x1xi32>
    %15 = vector.broadcast %14 : vector<8x1xi32> to vector<8x128xi32>
    %16 = arith.cmpi eq, %6, %15 : vector<8x128xi32>
    %17 = arith.extui %16 : vector<8x128xi1> to vector<8x128xi32>
    %18 = arith.sitofp %17 : vector<8x128xi32> to vector<8x128xf32>
    %cst_7 = arith.constant dense<0.000000e+00> : vector<8x32xf32>
    %19 = tpu.matmul %18, %1, %cst_7 {dimension_numbers = #tpu.dot_dimension_numbers<[1], [0], [0], [1], [0, 0, 1, 1], [], []>} : vector<8x128xf32>, vector<128x32xf32>, vector<8x32xf32> -> vector<8x32xf32>
    %c0_8 = arith.constant 0 : index
    %c0_9 = arith.constant 0 : index
    %20 = vector.load %arg4[%c0_8, %c0_9] : memref<8x32xf32, #tpu.memory_space<vmem>>, vector<8x32xf32>
    tpu.vector_store %arg4[%c0_8, %c0_9], %19 {strides = array<i32>} : memref<8x32xf32, #tpu.memory_space<vmem>>, vector<8x32xf32>,
    %21 = arith.subf %19, %0 : vector<8x32xf32>
    %22 = arith.mulf %21, %21 : vector<8x32xf32>
    %cst_10 = arith.constant dense<0.000000e+00> : vector<8xf32>
    %23 = vector.multi_reduction <add>, %22, %cst_10 [1] : vector<8x32xf32> to vector<8xf32>
    %24 = vector.shape_cast %23 : vector<8xf32> to vector<8x1xf32>
    %c0_11 = arith.constant 0 : index
    %c0_12 = arith.constant 0 : index
    %25 = vector.load %arg5[%c0_11, %c0_12] : memref<8x1xf32, #tpu.memory_space<vmem>>, vector<8x1xf32>
    tpu.vector_store %arg5[%c0_11, %c0_12], %24 {strides = array<i32>} : memref<8x1xf32, #tpu.memory_space<vmem>>, vector<8x1xf32>,
    return
  }
  func.func @transform_0(%arg0: i32) -> (i32, i32) {
    %c0_i32 = arith.constant 0 : i32
    %c0_i32_0 = arith.constant 0 : i32
    return %arg0, %c0_i32 : i32, i32
  }
  func.func @transform_1(%arg0: i32) -> (i32, i32) {
    %c0_i32 = arith.constant 0 : i32
    %c0_i32_0 = arith.constant 0 : i32
    %c0_i32_1 = arith.constant 0 : i32
    return %c0_i32, %c0_i32_0 : i32, i32
  }
  func.func @transform_2(%arg0: i32) -> (i32, i32) {
    %c0_i32 = arith.constant 0 : i32
    %c0_i32_0 = arith.constant 0 : i32
    %c0_i32_1 = arith.constant 0 : i32
    return %c0_i32, %c0_i32_0 : i32, i32
  }
  func.func @transform_3(%arg0: i32) -> (i32, i32) {
    %c0_i32 = arith.constant 0 : i32
    %c0_i32_0 = arith.constant 0 : i32
    return %arg0, %c0_i32 : i32, i32
  }
  func.func @transform_4(%arg0: i32) -> (i32, i32) {
    %c0_i32 = arith.constant 0 : i32
    %c0_i32_0 = arith.constant 0 : i32
    return %arg0, %c0_i32 : i32, i32
  }
}

module attributes {stable_mosaic.version = 11 : i64} {
  func.func @vq_kernel(%arg0: i32, %arg1: memref<8x32xf32, #tpu.memory_space<vmem>>, %arg2: memref<128x32xf32, #tpu.memory_space<vmem>>, %arg3: memref<1x128xf32, #tpu.memory_space<vmem>>, %arg4: memref<8x32xf32, #tpu.memory_space<vmem>>, %arg5: memref<8x1xf32, #tpu.memory_space<vmem>>) attributes {dimension_semantics = [#tpu.dimension_semantics<parallel>], iteration_bounds = array<i64: 2>, scalar_prefetch = 0 : i64, scratch_operands = 0 : i64, tpu.core_type = #tpu.core_type<tc>, window_params = [{transform_indices = @transform_0, window_bounds = array<i64: 8, 32>}, {pipeline_mode = #tpu.pipeline_mode<synchronous>, transform_indices = @transform_1, window_bounds = array<i64: 128, 32>}, {pipeline_mode = #tpu.pipeline_mode<synchronous>, transform_indices = @transform_2, window_bounds = array<i64: 1, 128>}, {transform_indices = @transform_3, window_bounds = array<i64: 8, 32>}, {transform_indices = @transform_4, window_bounds = array<i64: 8, 1>}]} {
    %c0 = arith.constant 0 : index
    %c0_0 = arith.constant 0 : index
    %0 = vector.load %arg1[%c0, %c0_0] : memref<8x32xf32, #tpu.memory_space<vmem>>, vector<8x32xf32>
    %c0_1 = arith.constant 0 : index
    %c0_2 = arith.constant 0 : index
    %1 = vector.load %arg2[%c0_1, %c0_2] : memref<128x32xf32, #tpu.memory_space<vmem>>, vector<128x32xf32>
    %cst = arith.constant dense<0.000000e+00> : vector<8x128xf32>
    %2 = tpu.matmul %0, %1, %cst {dimension_numbers = #tpu.dot_dimension_numbers<[1], [1], [0], [0], [0, 0, 1, 0], [], []>} : vector<8x32xf32>, vector<128x32xf32>, vector<8x128xf32> -> vector<8x128xf32>
    %c0_3 = arith.constant 0 : index
    %c0_4 = arith.constant 0 : index
    %3 = vector.load %arg3[%c0_3, %c0_4] : memref<1x128xf32, #tpu.memory_space<vmem>>, vector<1x128xf32>
    %4 = vector.broadcast %3 : vector<1x128xf32> to vector<8x128xf32>
    %5 = arith.subf %4, %2 : vector<8x128xf32>
    %6 = tpu.iota {dimensions = array<i32: 1>} : vector<8x128xi32>
    %cst_5 = arith.constant dense<0x7F800000> : vector<8xf32>
    %7 = vector.multi_reduction <minimumf>, %5, %cst_5 [1] : vector<8x128xf32> to vector<8xf32>
    %8 = vector.shape_cast %7 : vector<8xf32> to vector<8x1xf32>
    %9 = vector.broadcast %8 : vector<8x1xf32> to vector<8x128xf32>
    %10 = arith.cmpf oeq, %5, %9 : vector<8x128xf32>
    %c128_i32 = arith.constant 128 : i32
    %11 = vector.broadcast %c128_i32 : i32 to vector<8x128xi32>
    %12 = arith.select %10, %6, %11 : vector<8x128xi1>, vector<8x128xi32>
    %cst_6 = arith.constant dense<2147483647> : vector<8xi32>
    %13 = vector.multi_reduction <minsi>, %12, %cst_6 [1] : vector<8x128xi32> to vector<8xi32>
    %14 = vector.shape_cast %13 : vector<8xi32> to vector<8x1xi32>
    %15 = vector.broadcast %14 : vector<8x1xi32> to vector<8x128xi32>
    %16 = arith.cmpi eq, %6, %15 : vector<8x128xi32>
    %17 = arith.extui %16 : vector<8x128xi1> to vector<8x128xi32>
    %18 = arith.sitofp %17 : vector<8x128xi32> to vector<8x128xf32>
    %cst_7 = arith.constant dense<0.000000e+00> : vector<8x32xf32>
    %19 = tpu.matmul %18, %1, %cst_7 {dimension_numbers = #tpu.dot_dimension_numbers<[1], [0], [0], [1], [0, 0, 1, 1], [], []>} : vector<8x128xf32>, vector<128x32xf32>, vector<8x32xf32> -> vector<8x32xf32>
    %c0_8 = arith.constant 0 : index
    %c0_9 = arith.constant 0 : index
    %20 = vector.load %arg4[%c0_8, %c0_9] : memref<8x32xf32, #tpu.memory_space<vmem>>, vector<8x32xf32>
    tpu.vector_store %arg4[%c0_8, %c0_9], %19 {strides = array<i32>} : memref<8x32xf32, #tpu.memory_space<vmem>>, vector<8x32xf32>,
    %21 = arith.subf %19, %0 : vector<8x32xf32>
    %22 = arith.mulf %21, %21 : vector<8x32xf32>
    %cst_10 = arith.constant dense<0.000000e+00> : vector<8xf32>
    %23 = vector.multi_reduction <add>, %22, %cst_10 [1] : vector<8x32xf32> to vector<8xf32>
    %24 = vector.shape_cast %23 : vector<8xf32> to vector<8x1xf32>
    %c0_11 = arith.constant 0 : index
    %c0_12 = arith.constant 0 : index
    %25 = vector.load %arg5[%c0_11, %c0_12] : memref<8x1xf32, #tpu.memory_space<vmem>>, vector<8x1xf32>
    tpu.vector_store %arg5[%c0_11, %c0_12], %24 {strides = array<i32>} : memref<8x1xf32, #tpu.memory_space<vmem>>, vector<8x1xf32>,
    return
  }
  func.func @transform_0(%arg0: i32) -> (i32, i32) {
    %c0_i32 = arith.constant 0 : i32
    %c0_i32_0 = arith.constant 0 : i32
    return %arg0, %c0_i32 : i32, i32
  }
  func.func @transform_1(%arg0: i32) -> (i32, i32) {
    %c0_i32 = arith.constant 0 : i32
    %c0_i32_0 = arith.constant 0 : i32
    %c0_i32_1 = arith.constant 0 : i32
    return %c0_i32, %c0_i32_0 : i32, i32
  }
  func.func @transform_2(%arg0: i32) -> (i32, i32) {
    %c0_i32 = arith.constant 0 : i32
    %c0_i32_0 = arith.constant 0 : i32
    %c0_i32_1 = arith.constant 0 : i32
    return %c0_i32, %c0_i32_0 : i32, i32
  }
  func.func @transform_3(%arg0: i32) -> (i32, i32) {
    %c0_i32 = arith.constant 0 : i32
    %c0_i32_0 = arith.constant 0 : i32
    return %arg0, %c0_i32 : i32, i32
  }
  func.func @transform_4(%arg0: i32) -> (i32, i32) {
    %c0_i32 = arith.constant 0 : i32
    %c0_i32_0 = arith.constant 0 : i32
    return %arg0, %c0_i32 : i32, i32
  }
}

</mosaic_0001>

<bundles_post_ra>
// kernel: tpu_custom_call.1
= control target key start
LH: loop header
LB: loop body
LE: loop exit
PB: predicated region body
PF: predicated region fallthrough
CT: control target
= control target key end

     0   :  { %10 = vsyncpa [#allocation3], 0  ;;  %s781_s0 = inlined_call_operand.vmem [shape: f32[16,32], index: 0, kind: input, shape index: {}]   ;;  %s782_s1 = inlined_call_operand.vmem [shape: f32[128,32], index: 1, kind: input, shape index: {}]   ;;  %s783_s2 = inlined_call_operand.vmem [shape: f32[1,128], index: 2, kind: input, shape index: {}]   ;;  %s784_s3 = inlined_call_operand.hbm [shape: f32[16,32], index: 3, kind: output, shape index: {0}]   ;;  %s785_s4 = inlined_call_operand.vmem [shape: f32[16,1], index: 4, kind: output, shape index: {1}]  }
   0x1   :  { %12 = vsyncpa [#allocation3 + $0x1], 0  ;;  %s616_s15 = smov 0   ;;  %s618_s16 = smov 0  }
   0x2   :  { %s620_s17 = smov 0   ;;  %s622_s18 = smov 0  }
   0x3 LB: > { %s637_s19 = sadd.s32 4294967295, %s588_s18   ;;  %s455_s20 = sadd.s32 4294967294, %s588_s18   ;;  %s588_s18 = sphi %s622_s18, %s791_s18   ;;  %s584_s17 = sphi %s620_s17, %s790_s17   ;;  %s580_s16 = sphi %s618_s16, %s789_s16   ;;  %s576_s15 = sphi %s616_s15, %s788_s15  }
   0x4   : > { %s641_s21 = sadd.s32 1, %s588_s18   ;;  %s93_s22 = sadd.s32 1, %s584_s17 }
   0x5   : > { %s90_s23 = ssub.s32 %s588_s18, %s641_s21  ;;  %p103_p0 = scmp.ne.s32.totalorder %s584_s17, %s580_s16 }
   0x6   : > { %p91_p1 = scmp.eq.s32.totalorder %s90_s23, 0  ;;  %p104_p2 = scmp.eq.s32.totalorder %s637_s19, 1 }
   0x7   : > { %p109_p3 = scmp.ne.s32.totalorder %s580_s16, %s576_s15  ;;  %p110_p4 = scmp.eq.s32.totalorder %s455_s20, 1 }
   0x8   : > { %s652_s24 = scalar_select %p91_p1, %s584_s17, %s93_s22  }
   0x9   : > { %p654_p5 = por %p104_p2, %p103_p0  ;;  %p658_p6 = por %p110_p4, %p109_p3 }
   0xa   : > { %p458_p7 = scmp.ge.s32.totalorder %s588_s18, 1  ;;  %p167_p8 = scmp.lt.s32.totalorder %s588_s18, 3 }
   0xc   : > { %p168_p9 = pnand %p458_p7, %p167_p8 }
   0xd   : > { %p196_p10 = scmp.lt.s32.totalorder (!%p168_p9), %s637_s19, 1  ;;  %s187_s6 = sand.u32 (!%p168_p9), 1, %s580_s16  }
   0xe   : > { %171 = sbr.rel (%p168_p9) target bundleno = 820 (0x334), region = 32  ;;  %s482_s7 = sshll.u32 (!%p168_p9), %s637_s19, 3 }
   0xf   : > { %s459_s8 = sshll.u32 (!%p168_p9), %s187_s6, 3  ;;  %s364_s11 = scalar_lea.hbm (!%p168_p9), %s784_s3, %s482_s7 }
  0x10   : > { %s189_s12 = scalar_lea.vmem (!%p168_p9), [#allocation2], %s459_s8  ;;  %s368_s14 = sshll.u32 (!%p168_p9), %s364_s11, 4  ;;  %s369_s14 = int_to_ptr.hbm [resolvable:$true] %s368_s14 }
  0x11   : > { %s366_s13 = sshll.u32 (!%p168_p9), %s189_s12, 4  ;;  %s350_s20 = scalar_lea.sflag (!%p168_p9), [#allocation3], %s187_s6  ;;  %s367_s13 = int_to_ptr.vmem [resolvable:$true] %s366_s13 }
  0x12   : > { %s540_s27 = sshra.s32 (!%p168_p9), %s369_s14, 4  ;;  %s546_s30 = scalar_lea.hbm (!%p168_p9), %s784_s3, 16  ;;  %s541_s27 = int_to_ptr.hbm [resolvable:$true] %s540_s27 }
  0x13   : > { %v220_v0 = vld [vmem:[%s782_s1 + $0x78] sm:$0xff]  ;;  %vm221_vm0 = vcmask 261120   ;;  %v219_v1 = vld [vmem:[%s782_s1 + $0x70] sm:$0xff]  ;;  %v218_v2 = vld [vmem:[%s782_s1 + $0x68] sm:$0xff]  ;;  %s727_s22 = scalar_select %p196_p10, %s637_s19, 1  ;;  %v298_v20 = vlaneseq  ;;  %v590_v35 = vmov 1.0  }
  0x14   : > { %462 = vmatpush.xpose.msk.msra.mxu0 %vm221_vm0, %v220_v0  ;;  %321 = vmatpush.msra.mxu1 %v220_v0  ;;  %v217_v3 = vld [vmem:[%s782_s1 + $0x60] sm:$0xff]  ;;  %v216_v4 = vld [vmem:[%s782_s1 + $0x58] sm:$0xff]  ;;  %v215_v5 = vld [vmem:[%s782_s1 + $0x50] sm:$0xff]  ;;  %s542_s28 = scalar_lea.hbm %s541_s27, 8  ;;  %p547_p0 = scmp.lt.s32.totalorder %s541_s27, %s784_s3 }
  0x15   : > { %v214_v6 = vld [vmem:[%s782_s1 + $0x48] sm:$0xff]  ;;  %v213_v7 = vld [vmem:[%s782_s1 + $0x40] sm:$0xff]  ;;  %v212_v8 = vld [vmem:[%s782_s1 + $0x38] sm:$0xff]  ;;  %s460_s23 = sshll.u32 %s727_s22, 3  ;;  %v299_v21 = vand.u32 127, %v298_v20  ;;  %p543_p11 = scmp.ne.s32.totalorder %s541_s27, %s542_s28 }
  0x16   : > { %322 = vmatpush.msra.mxu1 %v219_v1  ;;  %v211_v9 = vld [vmem:[%s782_s1 + $0x30] sm:$0xff]  ;;  %v210_v10 = vld [vmem:[%s782_s1 + $0x28] sm:$0xff]  ;;  %v209_v11 = vld [vmem:[%s782_s1 + $0x20] sm:$0xff]  ;;  %s199_s29 = scalar_lea.vmem %s781_s0, %s460_s23  ;;  %p548_p1 = scmp.lt.s32.totalorder %s546_s30, %s542_s28 }
  0x17   : > { %v208_v12 = vld [vmem:[%s782_s1 + $0x18] sm:$0xff]  ;;  %v207_v13 = vld [vmem:[%s782_s1 + $0x10] sm:$0xff]  ;;  %v206_v14 = vld [vmem:[%s782_s1 + $0x8] sm:$0xff]  ;;  %p544_p12 = pnand %p543_p11, %p654_p5 }
  0x18   : > { %463 = vmatpush.xpose.msk.msra.mxu0 %vm221_vm0, %v219_v1  ;;  %323 = vmatpush.msra.mxu1 %v218_v2  ;;  %v205_v15 = vld [vmem:[%s782_s1] sm:$0xff]  ;;  %p549_p2 = por %p548_p1, %p547_p0 }
  0x19   : > { %v204_v16 = vld [vmem:[%s199_s29] sm:$0xff]  ;;  %p545_p13 = pneg %p544_p12 }
  0x1a   : > { %324 = vmatpush.msra.mxu1 %v217_v3  ;;  %v525_v17 = vld [vmem:[%s783_s2] ss:$0 sm:$0xff] }
  0x1b   : > { %p550_p3 = pnand %p549_p2, %p545_p13 }
  0x1c   : > { %464 = vmatpush.xpose.msk.msra.mxu0 %vm221_vm0, %v218_v2  ;;  %325 = vmatpush.msra.mxu1 %v216_v4 }
  0x1e   : > { %326 = vmatpush.msra.mxu1 %v215_v5 }
  0x20   : > { %465 = vmatpush.xpose.msk.msra.mxu0 %vm221_vm0, %v217_v3  ;;  %327 = vmatpush.msra.mxu1 %v214_v6 }
  0x22   : > { %328 = vmatpush.msra.mxu1 %v213_v7 }
  0x24   : > { %466 = vmatpush.xpose.msk.msra.mxu0 %vm221_vm0, %v216_v4  ;;  %329 = vmatpush.msra.mxu1 %v212_v8 }
  0x26   : > { %330 = vmatpush.msra.mxu1 %v211_v9 }
  0x28   : > { %467 = vmatpush.xpose.msk.msra.mxu0 %vm221_vm0, %v215_v5  ;;  %331 = vmatpush.msra.mxu1 %v210_v10 }
  0x2a   : > { %332 = vmatpush.msra.mxu1 %v209_v11 }
  0x2c   : > { %468 = vmatpush.xpose.msk.msra.mxu0 %vm221_vm0, %v214_v6  ;;  %333 = vmatpush.msra.mxu1 %v208_v12 }
  0x2e   : > { %334 = vmatpush.msra.mxu1 %v207_v13 }
  0x30   : > { %469 = vmatpush.xpose.msk.msra.mxu0 %vm221_vm0, %v213_v7  ;;  %335 = vmatpush.msra.mxu1 %v206_v14 }
  0x32   : > { %336 = vmatpush.msra.mxu1 %v205_v15 }
  0x34   : > { %470 = vmatpush.xpose.msk.msra.mxu0 %vm221_vm0, %v212_v8 }
  0x38   : > { %471 = vmatpush.xpose.msk.msra.mxu0 %vm221_vm0, %v211_v9 }
  0x3c   : > { %472 = vmatpush.xpose.msk.msra.mxu0 %vm221_vm0, %v210_v10 }
  0x40   : > { %473 = vmatpush.xpose.msk.msra.mxu0 %vm221_vm0, %v209_v11 }
  0x44   : > { %474 = vmatpush.xpose.msk.msra.mxu0 %vm221_vm0, %v208_v12 }
  0x48   : > { %475 = vmatpush.xpose.msk.msra.mxu0 %vm221_vm0, %v207_v13 }
  0x4c   : > { %476 = vmatpush.xpose.msk.msra.mxu0 %vm221_vm0, %v206_v14 }
  0x50   : > { %477 = vmatpush.xpose.msk.msra.mxu0 %vm221_vm0, %v205_v15 }
  0x53   : > { %478 = vmatmul.msk.f32.vlgmr.msra.gmra.mxu0 %vm221_vm0, %v204_v16 }
  0xd0   : > { %v290_v18 = vpop.f32.mrf.mxu0 }
  0xd1   : > { %v297_v19 = vsub.f32 %v525_v17, %v290_v18 }
  0xd3   : > { %300 = vmin.xlane.f32.xlu0 %v297_v19 }
 0x146   : > { %v301_v22 = vpop.xlane.xlu0 %300 }
 0x147   : > { %vm302_vm1 = vcmp.eq.f32.partialorder %v297_v19, %v301_v22 }
 0x148   : > { %v303_v23 = vsel %vm302_vm1, %v299_v21, 128 }
 0x149   : > { %v305_v24 = vshra.s32 %v303_v23, 16  ;;  %v304_v26 = vand.u32 65535, %v303_v23 }
 0x14b   : > { %v307_v25 = vcvt.s32.f32 %v305_v24  ;;  %v306_v28 = vcvt.s32.f32 %v304_v26 }
 0x14d   : > { %308 = vmin.xlane.f32.xlu0 %v307_v25 }
 0x1c0   : > { %v309_v27 = vpop.xlane.xlu0 %308 }
 0x1c1   : > { %vm310_vm2 = vcmp.eq.f32.partialorder %v307_v25, %v309_v27  ;;  %v315_v30 = vcvt.f32.s32 %v309_v27 }
 0x1c2   : > { %v311_v29 = vsel %vm310_vm2, %v306_v28, inf }
 0x1c3   : > { %312 = vmin.xlane.f32.xlu1 %v311_v29  ;;  %v316_v32 = vshll.u32 %v315_v30, 16 }
 0x236   : > { %v313_v31 = vpop.xlane.xlu1 %312 }
 0x237   : > { %v314_v33 = vcvt.f32.s32 %v313_v31 }
 0x239   : > { %v317_v34 = vadd.s32 %v316_v32, %v314_v33 }
 0x23b   : > { %vm318_vm3 = vcmp.eq.s32.totalorder %v299_v21, %v317_v34 }
 0x23c   : > { %480 = vmatmul.msk.f32.vlgmr.msra.gmra.mxu1 %vm318_vm3, %v590_v35 }
 0x2b9   : > { %v338_v36 = vpop.f32.mrf.mxu1 }
 0x2ba   : > { %341 = vst.msk [vmem:[%s189_s12] sm:$0xff] %vm221_vm0, %v338_v36  ;;  %v342_v37 = vsub.f32 %v338_v36, %v204_v16 }
 0x2bb   : > { %553 = shalt.err (!%p550_p3)
}
 0x2bc   : > { %485 = dma.vmem_to_hbm [thread:$0]  (%p654_p5), %s367_s13, 128, %s369_s14, %s350_s20   ;;  %v343_v38 = vmul.f32 %v342_v37, %v342_v37  ;;  %vm347_vm4 = vcmask 7168  }
 0x2bd   : > { %s203_s9 = scalar_lea.vmem %s785_s4, %s460_s23 }
 0x2be   : > { %v344_v39 = vsel %vm221_vm0, %v343_v38, 0.0 }
 0x2bf   : > { %345 = vadd.xlane.f32.xlu1 %v344_v39 }
 0x332   : > { %v346_v40 = vpop.xlane.xlu1 %345 }
 0x333   : > { %348 = vst.msk [vmem:[%s203_s9] sm:$0xff] %vm347_vm4, %v346_v40 }
 0x334 PF: > { %p491_p4 = scmp.ge.s32.totalorder %s588_s18, 2  ;;  %s383_s25 = sand.u32 1, %s576_s15  }
 0x335   : > { %s384_s10 = scalar_lea.sflag [#allocation3], %s383_s25 }
 0x336   : > { %p488_p5 = pnand %p491_p4, %p658_p6 }
 0x338   : > { %p489_p7 = pneg %p488_p5 }
 0x33a   : > { %571 = dma.done.wait (%p489_p7), %s384_s10, 128  }
 0x33b   : > { %573 = vsyncadd (%p489_p7), %s384_s10, 4294967168  ;;  %p15_p8 = scmp.ge.s32.totalorder %s641_s21, 4   ;;  %s788_s15 = smov %s580_s16 }
 0x33c   : > { %s789_s16 = smov %s584_s17  ;;  %s790_s17 = smov %s652_s24 }
 0x33d   : > { %s791_s18 = smov %s641_s21  ;;  %17 = sbr.rel (!%p15_p8) target bundleno = 3 (0x3), region = 79 }
 0x342   :  { %397 = vsyncpa [#allocation3], 1 }
 0x343   :  { %399 = vsyncpa [#allocation3 + $0x1], 1 }

// kernel: tpu_custom_call.1
= control target key start
LH: loop header
LB: loop body
LE: loop exit
PB: predicated region body
PF: predicated region fallthrough
CT: control target
= control target key end

     0   :  { %10 = vsyncpa [#allocation3], 0  ;;  %s781_s0 = inlined_call_operand.vmem [shape: f32[16,32], index: 0, kind: input, shape index: {}]   ;;  %s782_s1 = inlined_call_operand.vmem [shape: f32[128,32], index: 1, kind: input, shape index: {}]   ;;  %s783_s2 = inlined_call_operand.vmem [shape: f32[1,128], index: 2, kind: input, shape index: {}]   ;;  %s784_s3 = inlined_call_operand.hbm [shape: f32[16,32], index: 3, kind: output, shape index: {0}]   ;;  %s785_s4 = inlined_call_operand.vmem [shape: f32[16,1], index: 4, kind: output, shape index: {1}]  }
   0x1   :  { %12 = vsyncpa [#allocation3 + $0x1], 0  ;;  %s616_s15 = smov 0   ;;  %s618_s16 = smov 0  }
   0x2   :  { %s620_s17 = smov 0   ;;  %s622_s18 = smov 0  }
   0x3 LB: > { %s637_s19 = sadd.s32 4294967295, %s588_s18   ;;  %s455_s20 = sadd.s32 4294967294, %s588_s18   ;;  %s588_s18 = sphi %s622_s18, %s791_s18   ;;  %s584_s17 = sphi %s620_s17, %s790_s17   ;;  %s580_s16 = sphi %s618_s16, %s789_s16   ;;  %s576_s15 = sphi %s616_s15, %s788_s15  }
   0x4   : > { %s641_s21 = sadd.s32 1, %s588_s18   ;;  %s93_s22 = sadd.s32 1, %s584_s17 }
   0x5   : > { %s90_s23 = ssub.s32 %s588_s18, %s641_s21  ;;  %p103_p0 = scmp.ne.s32.totalorder %s584_s17, %s580_s16 }
   0x6   : > { %p91_p1 = scmp.eq.s32.totalorder %s90_s23, 0  ;;  %p104_p2 = scmp.eq.s32.totalorder %s637_s19, 1 }
   0x7   : > { %p109_p3 = scmp.ne.s32.totalorder %s580_s16, %s576_s15  ;;  %p110_p4 = scmp.eq.s32.totalorder %s455_s20, 1 }
   0x8   : > { %s652_s24 = scalar_select %p91_p1, %s584_s17, %s93_s22  }
   0x9   : > { %p654_p5 = por %p104_p2, %p103_p0  ;;  %p658_p6 = por %p110_p4, %p109_p3 }
   0xa   : > { %p458_p7 = scmp.ge.s32.totalorder %s588_s18, 1  ;;  %p167_p8 = scmp.lt.s32.totalorder %s588_s18, 3 }
   0xc   : > { %p168_p9 = pnand %p458_p7, %p167_p8 }
   0xd   : > { %p196_p10 = scmp.lt.s32.totalorder (!%p168_p9), %s637_s19, 1  ;;  %s187_s6 = sand.u32 (!%p168_p9), 1, %s580_s16  }
   0xe   : > { %171 = sbr.rel (%p168_p9) target bundleno = 820 (0x334), region = 32  ;;  %s482_s7 = sshll.u32 (!%p168_p9), %s637_s19, 3 }
   0xf   : > { %s459_s8 = sshll.u32 (!%p168_p9), %s187_s6, 3  ;;  %s364_s11 = scalar_lea.hbm (!%p168_p9), %s784_s3, %s482_s7 }
  0x10   : > { %s189_s12 = scalar_lea.vmem (!%p168_p9), [#allocation2], %s459_s8  ;;  %s368_s14 = sshll.u32 (!%p168_p9), %s364_s11, 4  ;;  %s369_s14 = int_to_ptr.hbm [resolvable:$true] %s368_s14 }
  0x11   : > { %s366_s13 = sshll.u32 (!%p168_p9), %s189_s12, 4  ;;  %s350_s20 = scalar_lea.sflag (!%p168_p9), [#allocation3], %s187_s6  ;;  %s367_s13 = int_to_ptr.vmem [resolvable:$true] %s366_s13 }
  0x12   : > { %s540_s27 = sshra.s32 (!%p168_p9), %s369_s14, 4  ;;  %s546_s30 = scalar_lea.hbm (!%p168_p9), %s784_s3, 16  ;;  %s541_s27 = int_to_ptr.hbm [resolvable:$true] %s540_s27 }
  0x13   : > { %v220_v0 = vld [vmem:[%s782_s1 + $0x78] sm:$0xff]  ;;  %vm221_vm0 = vcmask 261120   ;;  %v219_v1 = vld [vmem:[%s782_s1 + $0x70] sm:$0xff]  ;;  %v218_v2 = vld [vmem:[%s782_s1 + $0x68] sm:$0xff]  ;;  %s727_s22 = scalar_select %p196_p10, %s637_s19, 1  ;;  %v298_v20 = vlaneseq  ;;  %v590_v35 = vmov 1.0  }
  0x14   : > { %462 = vmatpush.xpose.msk.msra.mxu0 %vm221_vm0, %v220_v0  ;;  %321 = vmatpush.msra.mxu1 %v220_v0  ;;  %v217_v3 = vld [vmem:[%s782_s1 + $0x60] sm:$0xff]  ;;  %v216_v4 = vld [vmem:[%s782_s1 + $0x58] sm:$0xff]  ;;  %v215_v5 = vld [vmem:[%s782_s1 + $0x50] sm:$0xff]  ;;  %s542_s28 = scalar_lea.hbm %s541_s27, 8  ;;  %p547_p0 = scmp.lt.s32.totalorder %s541_s27, %s784_s3 }
  0x15   : > { %v214_v6 = vld [vmem:[%s782_s1 + $0x48] sm:$0xff]  ;;  %v213_v7 = vld [vmem:[%s782_s1 + $0x40] sm:$0xff]  ;;  %v212_v8 = vld [vmem:[%s782_s1 + $0x38] sm:$0xff]  ;;  %s460_s23 = sshll.u32 %s727_s22, 3  ;;  %v299_v21 = vand.u32 127, %v298_v20  ;;  %p543_p11 = scmp.ne.s32.totalorder %s541_s27, %s542_s28 }
  0x16   : > { %322 = vmatpush.msra.mxu1 %v219_v1  ;;  %v211_v9 = vld [vmem:[%s782_s1 + $0x30] sm:$0xff]  ;;  %v210_v10 = vld [vmem:[%s782_s1 + $0x28] sm:$0xff]  ;;  %v209_v11 = vld [vmem:[%s782_s1 + $0x20] sm:$0xff]  ;;  %s199_s29 = scalar_lea.vmem %s781_s0, %s460_s23  ;;  %p548_p1 = scmp.lt.s32.totalorder %s546_s30, %s542_s28 }
  0x17   : > { %v208_v12 = vld [vmem:[%s782_s1 + $0x18] sm:$0xff]  ;;  %v207_v13 = vld [vmem:[%s782_s1 + $0x10] sm:$0xff]  ;;  %v206_v14 = vld [vmem:[%s782_s1 + $0x8] sm:$0xff]  ;;  %p544_p12 = pnand %p543_p11, %p654_p5 }
  0x18   : > { %463 = vmatpush.xpose.msk.msra.mxu0 %vm221_vm0, %v219_v1  ;;  %323 = vmatpush.msra.mxu1 %v218_v2  ;;  %v205_v15 = vld [vmem:[%s782_s1] sm:$0xff]  ;;  %p549_p2 = por %p548_p1, %p547_p0 }
  0x19   : > { %v204_v16 = vld [vmem:[%s199_s29] sm:$0xff]  ;;  %p545_p13 = pneg %p544_p12 }
  0x1a   : > { %324 = vmatpush.msra.mxu1 %v217_v3  ;;  %v525_v17 = vld [vmem:[%s783_s2] ss:$0 sm:$0xff] }
  0x1b   : > { %p550_p3 = pnand %p549_p2, %p545_p13 }
  0x1c   : > { %464 = vmatpush.xpose.msk.msra.mxu0 %vm221_vm0, %v218_v2  ;;  %325 = vmatpush.msra.mxu1 %v216_v4 }
  0x1e   : > { %326 = vmatpush.msra.mxu1 %v215_v5 }
  0x20   : > { %465 = vmatpush.xpose.msk.msra.mxu0 %vm221_vm0, %v217_v3  ;;  %327 = vmatpush.msra.mxu1 %v214_v6 }
  0x22   : > { %328 = vmatpush.msra.mxu1 %v213_v7 }
  0x24   : > { %466 = vmatpush.xpose.msk.msra.mxu0 %vm221_vm0, %v216_v4  ;;  %329 = vmatpush.msra.mxu1 %v212_v8 }
  0x26   : > { %330 = vmatpush.msra.mxu1 %v211_v9 }
  0x28   : > { %467 = vmatpush.xpose.msk.msra.mxu0 %vm221_vm0, %v215_v5  ;;  %331 = vmatpush.msra.mxu1 %v210_v10 }
  0x2a   : > { %332 = vmatpush.msra.mxu1 %v209_v11 }
  0x2c   : > { %468 = vmatpush.xpose.msk.msra.mxu0 %vm221_vm0, %v214_v6  ;;  %333 = vmatpush.msra.mxu1 %v208_v12 }
  0x2e   : > { %334 = vmatpush.msra.mxu1 %v207_v13 }
  0x30   : > { %469 = vmatpush.xpose.msk.msra.mxu0 %vm221_vm0, %v213_v7  ;;  %335 = vmatpush.msra.mxu1 %v206_v14 }
  0x32   : > { %336 = vmatpush.msra.mxu1 %v205_v15 }
  0x34   : > { %470 = vmatpush.xpose.msk.msra.mxu0 %vm221_vm0, %v212_v8 }
  0x38   : > { %471 = vmatpush.xpose.msk.msra.mxu0 %vm221_vm0, %v211_v9 }
  0x3c   : > { %472 = vmatpush.xpose.msk.msra.mxu0 %vm221_vm0, %v210_v10 }
  0x40   : > { %473 = vmatpush.xpose.msk.msra.mxu0 %vm221_vm0, %v209_v11 }
  0x44   : > { %474 = vmatpush.xpose.msk.msra.mxu0 %vm221_vm0, %v208_v12 }
  0x48   : > { %475 = vmatpush.xpose.msk.msra.mxu0 %vm221_vm0, %v207_v13 }
  0x4c   : > { %476 = vmatpush.xpose.msk.msra.mxu0 %vm221_vm0, %v206_v14 }
  0x50   : > { %477 = vmatpush.xpose.msk.msra.mxu0 %vm221_vm0, %v205_v15 }
  0x53   : > { %478 = vmatmul.msk.f32.vlgmr.msra.gmra.mxu0 %vm221_vm0, %v204_v16 }
  0xd0   : > { %v290_v18 = vpop.f32.mrf.mxu0 }
  0xd1   : > { %v297_v19 = vsub.f32 %v525_v17, %v290_v18 }
  0xd3   : > { %300 = vmin.xlane.f32.xlu0 %v297_v19 }
 0x146   : > { %v301_v22 = vpop.xlane.xlu0 %300 }
 0x147   : > { %vm302_vm1 = vcmp.eq.f32.partialorder %v297_v19, %v301_v22 }
 0x148   : > { %v303_v23 = vsel %vm302_vm1, %v299_v21, 128 }
 0x149   : > { %v305_v24 = vshra.s32 %v303_v23, 16  ;;  %v304_v26 = vand.u32 65535, %v303_v23 }
 0x14b   : > { %v307_v25 = vcvt.s32.f32 %v305_v24  ;;  %v306_v28 = vcvt.s32.f32 %v304_v26 }
 0x14d   : > { %308 = vmin.xlane.f32.xlu0 %v307_v25 }
 0x1c0   : > { %v309_v27 = vpop.xlane.xlu0 %308 }
 0x1c1   : > { %vm310_vm2 = vcmp.eq.f32.partialorder %v307_v25, %v309_v27  ;;  %v315_v30 = vcvt.f32.s32 %v309_v27 }
 0x1c2   : > { %v311_v29 = vsel %vm310_vm2, %v306_v28, inf }
 0x1c3   : > { %312 = vmin.xlane.f32.xlu1 %v311_v29  ;;  %v316_v32 = vshll.u32 %v315_v30, 16 }
 0x236   : > { %v313_v31 = vpop.xlane.xlu1 %312 }
 0x237   : > { %v314_v33 = vcvt.f32.s32 %v313_v31 }
 0x239   : > { %v317_v34 = vadd.s32 %v316_v32, %v314_v33 }
 0x23b   : > { %vm318_vm3 = vcmp.eq.s32.totalorder %v299_v21, %v317_v34 }
 0x23c   : > { %480 = vmatmul.msk.f32.vlgmr.msra.gmra.mxu1 %vm318_vm3, %v590_v35 }
 0x2b9   : > { %v338_v36 = vpop.f32.mrf.mxu1 }
 0x2ba   : > { %341 = vst.msk [vmem:[%s189_s12] sm:$0xff] %vm221_vm0, %v338_v36  ;;  %v342_v37 = vsub.f32 %v338_v36, %v204_v16 }
 0x2bb   : > { %553 = shalt.err (!%p550_p3)
}
 0x2bc   : > { %485 = dma.vmem_to_hbm [thread:$0]  (%p654_p5), %s367_s13, 128, %s369_s14, %s350_s20   ;;  %v343_v38 = vmul.f32 %v342_v37, %v342_v37  ;;  %vm347_vm4 = vcmask 7168  }
 0x2bd   : > { %s203_s9 = scalar_lea.vmem %s785_s4, %s460_s23 }
 0x2be   : > { %v344_v39 = vsel %vm221_vm0, %v343_v38, 0.0 }
 0x2bf   : > { %345 = vadd.xlane.f32.xlu1 %v344_v39 }
 0x332   : > { %v346_v40 = vpop.xlane.xlu1 %345 }
 0x333   : > { %348 = vst.msk [vmem:[%s203_s9] sm:$0xff] %vm347_vm4, %v346_v40 }
 0x334 PF: > { %p491_p4 = scmp.ge.s32.totalorder %s588_s18, 2  ;;  %s383_s25 = sand.u32 1, %s576_s15  }
 0x335   : > { %s384_s10 = scalar_lea.sflag [#allocation3], %s383_s25 }
 0x336   : > { %p488_p5 = pnand %p491_p4, %p658_p6 }
 0x338   : > { %p489_p7 = pneg %p488_p5 }
 0x33a   : > { %571 = dma.done.wait (%p489_p7), %s384_s10, 128  }
 0x33b   : > { %573 = vsyncadd (%p489_p7), %s384_s10, 4294967168  ;;  %p15_p8 = scmp.ge.s32.totalorder %s641_s21, 4   ;;  %s788_s15 = smov %s580_s16 }
 0x33c   : > { %s789_s16 = smov %s584_s17  ;;  %s790_s17 = smov %s652_s24 }
 0x33d   : > { %s791_s18 = smov %s641_s21  ;;  %17 = sbr.rel (!%p15_p8) target bundleno = 3 (0x3), region = 79 }
 0x342   :  { %397 = vsyncpa [#allocation3], 1 }
 0x343   :  { %399 = vsyncpa [#allocation3 + $0x1], 1 }

</bundles_post_ra>
